<compile_context>
chip_gen: v7x
topology: tpu7x:2x2x1
jax: 0.10.0
libtpu: 0.0.40
codegen_flags: <defaults>
</compile_context>

<pallas_src>
import numpy as np
import jax
import jax.numpy as jnp
from jax.experimental import pallas as pl
from jax.experimental.pallas import tpu as pltpu


def _uncertainty_kernel(scaled_sum_ref, log_var_ref, scale_count_ref, out_ref):
    # out = scale*sum(loss) * exp(-log_var) + scale*numel(loss) * log_var
    log_var = log_var_ref[...]
    precision = jnp.exp(-log_var)  # EUP slot; every other unit is idle here
    out_ref[...] = scaled_sum_ref[...] * precision + scale_count_ref[...] * log_var


def _uncertainty_pallas(scaled_sums, log_vars, scale_counts):
    # All operands are (1, P) f32 with P a multiple of 128: one grid-less
    # full-array call, whole operands resident in VMEM.
    p = scaled_sums.shape[-1]
    vmem_spec = pl.BlockSpec(memory_space=pltpu.MemorySpace.VMEM)
    return pl.pallas_call(
        _uncertainty_kernel,
        out_shape=jax.ShapeDtypeStruct((1, p), jnp.float32),
        in_specs=[vmem_spec, vmem_spec, vmem_spec],
        out_specs=vmem_spec,
    )(scaled_sums, log_vars, scale_counts)


class UncertaintyMultiTaskLoss:
    """JAX/Pallas port of the PyTorch UncertaintyMultiTaskLoss module (forward only)."""

    def __init__(self, target_cat_columns, target_con_columns):
        self.target_cat_columns = list(target_cat_columns)
        self.target_con_columns = list(target_con_columns)
        self.columns = self.target_cat_columns + self.target_con_columns

        k = len(self.columns)
        p = max(128, ((k + 127) // 128) * 128)
        self._k, self._p = k, p

        # nn.Parameter(torch.zeros(1)) per column -> natively packed (1,P) f32 row,
        # zero init.  Padding lanes stay 0 (finite, never read back).
        # TODO(synk): training use needs a custom_vjp through pallas_call for grads.
        self.log_vars = jnp.zeros((1, p), jnp.float32)

        # Static per-column scale (2.0 categorical, 1.0 continuous), built once.
        scales_np = np.asarray(
            [2.0 if c in self.target_cat_columns else 1.0 for c in self.columns],
            np.float32,
        )
        scales_k = jnp.asarray(scales_np)  # (k,) constant, folded at trace time
        cols = tuple(self.columns)

        @jax.jit
        def _forward(losses_dict, log_vars_packed):
            # Per-column sums: scalar losses pass through, non-scalar ones get
            # reduced; these K reductions fuse with the stack inside this jit.
            # TODO(synk): for large per-sample loss tensors, move these reductions
            # into a gridded Pallas kernel (parallel axis for v7x's 2 TCs, tiles
            # sized against 64 MiB VMEM) instead of reducing them in XLA here.
            loss_sums = jnp.stack(
                [jnp.sum(jnp.asarray(losses_dict[c], jnp.float32)) for c in cols]
            )
            scaled_sums = loss_sums * scales_k  # fold the 2.0/1.0 scale now

            # scale * numel(loss): pure trace-time numpy -> one embedded constant.
            # NOTE: changing a column's loss shape triggers a retrace (by design).
            counts = np.asarray(
                [float(np.prod(np.shape(losses_dict[c]), dtype=np.int64)) for c in cols],
                np.float32,
            )
            b = np.zeros((1, p), np.float32)
            b[0, :k] = scales_np * counts
            scale_counts = jnp.asarray(b)

            a = jnp.zeros((1, p), jnp.float32).at[0, :k].set(scaled_sums)
            out = _uncertainty_pallas(a, log_vars_packed, scale_counts)
            return out[0, :k]  # single lane-dense output from the executable

        self._forward = _forward

    def __call__(self, losses_dict):
        row = self._forward(losses_dict, self.log_vars)
        # Per-column dict assembled outside jit (keeps the executable to 1 output).
        return {c: row[i] for i, c in enumerate(self.columns)}


def _reference(losses_dict, module):
    """Pure-JAX reference mirroring the PyTorch forward exactly."""
    out = {}
    for i, c in enumerate(module.columns):
        log_var = module.log_vars[0, i]
        scalar = 2.0 if c in module.target_cat_columns else 1.0
        precision = jnp.exp(-log_var)
        out[c] = scalar * jnp.sum(
            precision * jnp.asarray(losses_dict[c], jnp.float32) + log_var
        )
    return out


if __name__ == "__main__":
    target_cat_columns = ["disease_status", "ancestry"]
    target_con_columns = ["height", "bmi"]

    module = UncertaintyMultiTaskLoss(target_cat_columns, target_con_columns)

    key = jax.random.PRNGKey(0)
    k_lv, k_loss, k_vec = jax.random.split(key, 3)

    # Non-trivial learned log-variances so exp(-log_var) is exercised.
    lv = 0.3 * jax.random.normal(k_lv, (module._k,), jnp.float32)
    module.log_vars = module.log_vars.at[0, : module._k].set(lv)

    all_cols = module.columns
    raw = jax.random.uniform(k_loss, (len(all_cols),), jnp.float32, 0.1, 2.0)
    losses_dict = {c: raw[i] for i, c in enumerate(all_cols)}
    # One non-scalar loss to exercise the torch.sum(...) semantics.
    losses_dict["bmi"] = jax.random.uniform(k_vec, (3,), jnp.float32, 0.1, 2.0)

    out = module(losses_dict)
    out = {c: jax.block_until_ready(v) for c, v in out.items()}

    ref = _reference(losses_dict, module)
    for c in all_cols:
        assert jnp.allclose(out[c], ref[c], atol=1e-5, rtol=1e-5), (c, out[c], ref[c])

    print("KERNEL_OK")
</pallas_src>

<mosaic_0001>
module attributes {stable_mosaic.version = 11 : i64} {
  func.func @_uncertainty_kernel(%arg0: memref<1x128xf32, #tpu.memory_space<vmem>>, %arg1: memref<1x128xf32, #tpu.memory_space<vmem>>, %arg2: memref<1x128xf32, #tpu.memory_space<vmem>>, %arg3: memref<1x128xf32, #tpu.memory_space<vmem>>) attributes {dimension_semantics = [], scalar_prefetch = 0 : i64, scratch_operands = 0 : i64, tpu.core_type = #tpu.core_type<tc>} {
    %c0 = arith.constant 0 : index
    %c0_0 = arith.constant 0 : index
    %0 = vector.load %arg1[%c0, %c0_0] : memref<1x128xf32, #tpu.memory_space<vmem>>, vector<1x128xf32>
    %cst = arith.constant 0.000000e+00 : f32
    %1 = vector.broadcast %cst : f32 to vector<1x128xf32>
    %2 = arith.subf %1, %0 : vector<1x128xf32>
    %3 = math.exp %2 : vector<1x128xf32>
    %c0_1 = arith.constant 0 : index
    %c0_2 = arith.constant 0 : index
    %4 = vector.load %arg0[%c0_1, %c0_2] : memref<1x128xf32, #tpu.memory_space<vmem>>, vector<1x128xf32>
    %5 = arith.mulf %4, %3 : vector<1x128xf32>
    %c0_3 = arith.constant 0 : index
    %c0_4 = arith.constant 0 : index
    %6 = vector.load %arg2[%c0_3, %c0_4] : memref<1x128xf32, #tpu.memory_space<vmem>>, vector<1x128xf32>
    %7 = arith.mulf %6, %0 : vector<1x128xf32>
    %8 = arith.addf %5, %7 : vector<1x128xf32>
    %c0_5 = arith.constant 0 : index
    %c0_6 = arith.constant 0 : index
    %9 = vector.load %arg3[%c0_5, %c0_6] : memref<1x128xf32, #tpu.memory_space<vmem>>, vector<1x128xf32>
    tpu.vector_store %arg3[%c0_5, %c0_6], %8 {strides = array<i32>} : memref<1x128xf32, #tpu.memory_space<vmem>>, vector<1x128xf32>,
    return
  }
}

</mosaic_0001>

<bundles_post_ra>
// kernel: _forward.1
= control target key start
LH: loop header
LB: loop body
LE: loop exit
PB: predicated region body
PF: predicated region fallthrough
CT: control target
= control target key end

     0   :  { %s62_s1 = inlined_call_operand.vmem [shape: f32[1,128], index: 1, kind: input, shape index: {}]   ;;  %s63_s2 = inlined_call_operand.vmem [shape: f32[1,128], index: 2, kind: input, shape index: {}]   ;;  %s64_s0 = inlined_call_operand.vmem [shape: f32[1,128], index: 0, kind: input, shape index: {}]   ;;  %s65_s3 = inlined_call_operand.vmem [shape: f32[1,128], index: 3, kind: output, shape index: {}]  }
   0x1   :  { %v14_v0 = vld [vmem:[%s62_s1] sm:$0x1] }
   0x2   :  { %v15_v1 = vsub.f32 0.0, %v14_v0  ;;  %v20_v3 = vld [vmem:[%s63_s2] sm:$0x1] }
   0x3   :  { %v18_v4 = vld [vmem:[%s64_s0] sm:$0x1]  ;;  %v21_v5 = vmul.f32 %v20_v3, %v14_v0 }
   0x4   :  { %v16_v2 = vmul.f32 1.442695, %v15_v1 }
   0x6   :  { %28 = vpow2.f32 %v16_v2 }
  0x10   :  { %v29_v6 = vpop.eup %28 }
  0x11   :  { %v19_v7 = vmul.f32 %v29_v6, %v18_v4 }
  0x13   :  { %v22_v8 = vadd.f32 %v21_v5, %v19_v7 }
  0x15   :  { %23 = vst [vmem:[%s65_s3] sm:$0x1] %v22_v8 }

</bundles_post_ra>
